<compile_context>
chip_gen: v7x
topology: tpu7x:2x2x1
jax: 0.10.0
libtpu: 0.0.40
codegen_flags: <defaults>
</compile_context>

<pallas_src>
import functools
import math

import jax
import jax.numpy as jnp
from jax.experimental import pallas as pl
from jax.experimental.pallas import tpu as pltpu


def _prelu(x, a):
    # PyTorch nn.PReLU with a single learnable slope.
    return jnp.where(x >= 0, x, a * x)


# ------------------------------ fused kernel ---------------------------------
def gated_transition_kernel(slope_ref,                       # SMEM (1,): PReLU slope
                            zu_ref,                          # (BR, ZU)
                            w1_ref, b1_ref,                  # merged layer 1
                            w2_ref, b2_ref,                  # block-diag layer 2
                            wsig_ref, bsig_ref,              # lin_sig
                            out_ref,                         # (BR, 2*Z): [z_loc | z_scale]
                            *, z_dim, transition_dim):
    f32 = jnp.float32
    a = slope_ref[0]                                         # scalar read from SMEM

    zu = zu_ref[...]

    # h = zu @ [W_gate_h | W_prop_h | W_loc] + [b_gate_h | b_prop_h | b_loc]
    h = jnp.dot(zu, w1_ref[...], preferred_element_type=f32) + b1_ref[...]
    hid = _prelu(h[:, :2 * transition_dim], a)               # [gate_hidden | prop_hidden]
    lin_loc = h[:, 2 * transition_dim:]                      # lin_z_to_loc(zu) (no PReLU)

    # gp = [gate_hidden @ W_gate_z + b | prop_hidden @ W_prop_z + b] (block-diag W)
    gp = jnp.dot(hid, w2_ref[...], preferred_element_type=f32) + b2_ref[...]
    gate = jax.nn.sigmoid(gp[:, :z_dim])
    proposed_mean = gp[:, z_dim:]

    z_loc = (1.0 - gate) * lin_loc + gate * proposed_mean
    z_scale = (jnp.dot(_prelu(proposed_mean, a), wsig_ref[...],
                       preferred_element_type=f32) + bsig_ref[...])

    out_ref[...] = jnp.concatenate([z_loc, z_scale], axis=-1)   # one packed store


# --------------------------------- wrapper ------------------------------------
def gated_transition_forward(params, z_t_1, u_t_1=None, block_rows=128):
    """Returns (z_loc, z_scale), matching GatedTransition.forward."""
    z_dim = params["w_gate_z"].shape[1]
    transition_dim = params["w_gate_h"].shape[1]

    if u_t_1 is not None:
        zu = jnp.concatenate([z_t_1, u_t_1], axis=1)
    else:
        zu = z_t_1
    rows, zu_dim = zu.shape

    # ---- merged weights (tiny, built once per call at trace time by XLA) ----
    w1 = jnp.concatenate([params["w_gate_h"], params["w_prop_h"], params["w_loc"]],
                         axis=1)                                      # (ZU, 2*TR + Z)
    b1 = jnp.concatenate([params["b_gate_h"], params["b_prop_h"], params["b_loc"]],
                         axis=1)                                      # (1, 2*TR + Z)
    w2 = jnp.zeros((2 * transition_dim, 2 * z_dim), jnp.float32)
    w2 = w2.at[:transition_dim, :z_dim].set(params["w_gate_z"])
    w2 = w2.at[transition_dim:, z_dim:].set(params["w_prop_z"])       # block-diag
    b2 = jnp.concatenate([params["b_gate_z"], params["b_prop_z"]], axis=1)
    slope = params["prelu"].reshape(1)

    br = block_rows if (rows % block_rows == 0) else rows
    grid = (rows // br,)
    w1_cols = 2 * transition_dim + z_dim

    kernel = functools.partial(gated_transition_kernel,
                               z_dim=z_dim, transition_dim=transition_dim)

    out = pl.pallas_call(
        kernel,
        grid=grid,
        in_specs=[
            pl.BlockSpec(memory_space=pltpu.MemorySpace.SMEM),            # PReLU slope
            pl.BlockSpec((br, zu_dim), lambda i: (i, 0)),                 # zu tile
            pl.BlockSpec((zu_dim, w1_cols), lambda i: (0, 0)),            # W1
            pl.BlockSpec((1, w1_cols), lambda i: (0, 0)),                 # b1
            pl.BlockSpec((2 * transition_dim, 2 * z_dim), lambda i: (0, 0)),  # W2
            pl.BlockSpec((1, 2 * z_dim), lambda i: (0, 0)),               # b2
            pl.BlockSpec((z_dim, z_dim), lambda i: (0, 0)),               # W_sig
            pl.BlockSpec((1, z_dim), lambda i: (0, 0)),                   # b_sig
        ],
        out_specs=pl.BlockSpec((br, 2 * z_dim), lambda i: (i, 0)),
        out_shape=jax.ShapeDtypeStruct((rows, 2 * z_dim), jnp.float32),
        compiler_params=pltpu.CompilerParams(dimension_semantics=("parallel",)),
    )(slope, zu, w1, b1, w2, b2, params["w_sig"], params["b_sig"])

    return out[:, :z_dim], out[:, z_dim:]


# ---------------------------- parameter construction --------------------------
def _linear(key, in_f, out_f):
    # PyTorch nn.Linear default init, stored transposed: y = x @ W + b.
    bound = 1.0 / math.sqrt(in_f)
    kw, kb = jax.random.split(key)
    w = jax.random.uniform(kw, (in_f, out_f), jnp.float32, -bound, bound)
    b = jax.random.uniform(kb, (1, out_f), jnp.float32, -bound, bound)
    return w, b


def init_gated_transition(key, z_dim, u_dim, transition_dim):
    keys = jax.random.split(key, 5)
    p = {}
    p["w_gate_h"], p["b_gate_h"] = _linear(keys[0], z_dim + u_dim, transition_dim)
    p["w_gate_z"], p["b_gate_z"] = _linear(keys[1], transition_dim, z_dim)
    p["w_prop_h"], p["b_prop_h"] = _linear(keys[2], z_dim + u_dim, transition_dim)
    p["w_prop_z"], p["b_prop_z"] = _linear(keys[3], transition_dim, z_dim)
    p["w_sig"], p["b_sig"] = _linear(keys[4], z_dim, z_dim)
    # lin_z_to_loc: identity weight / zero bias, exactly as the PyTorch module sets it.
    p["w_loc"] = jnp.eye(z_dim + u_dim, z_dim, dtype=jnp.float32)
    p["b_loc"] = jnp.zeros((1, z_dim), jnp.float32)
    p["prelu"] = jnp.full((1, 1), 0.25, jnp.float32)
    return p


# -------------------- pure-JAX reference (unmerged weights) --------------------
def gated_transition_reference(params, z_t_1, u_t_1=None):
    a = params["prelu"]
    zu = jnp.concatenate([z_t_1, u_t_1], axis=1) if u_t_1 is not None else z_t_1
    _gate = _prelu(zu @ params["w_gate_h"] + params["b_gate_h"], a)
    gate = jax.nn.sigmoid(_gate @ params["w_gate_z"] + params["b_gate_z"])
    _proposed = _prelu(zu @ params["w_prop_h"] + params["b_prop_h"], a)
    proposed_mean = _proposed @ params["w_prop_z"] + params["b_prop_z"]
    lin_loc = zu @ params["w_loc"] + params["b_loc"]
    z_loc = (1.0 - gate) * lin_loc + gate * proposed_mean
    z_scale = _prelu(proposed_mean, a) @ params["w_sig"] + params["b_sig"]
    return z_loc, z_scale


# ----------------------------------- main --------------------------------------
if __name__ == "__main__":
    Z_DIM, U_DIM, TRANSITION_DIM = 8, 4, 32
    ROWS = 256   # e.g. n_data=32 sequences of length T=8, flattened

    root = jax.random.PRNGKey(0)
    kp_u, kp_0, kz, ku = jax.random.split(root, 4)

    params_with_u = init_gated_transition(kp_u, Z_DIM, U_DIM, TRANSITION_DIM)
    params_no_u = init_gated_transition(kp_0, Z_DIM, 0, TRANSITION_DIM)

    z_t_1 = jax.random.normal(kz, (ROWS, Z_DIM), jnp.float32)
    u_t_1 = jax.random.normal(ku, (ROWS, U_DIM), jnp.float32)

    fwd = jax.jit(gated_transition_forward)

    # Case 1: with stimuli u_{t-1} (exercises the concat path).
    loc_u, scale_u = jax.block_until_ready(fwd(params_with_u, z_t_1, u_t_1))
    # Case 2: u_t_1 = None (as used inside the DMFA model).
    loc_0, scale_0 = jax.block_until_ready(fwd(params_no_u, z_t_1, None))

    ref_loc_u, ref_scale_u = gated_transition_reference(params_with_u, z_t_1, u_t_1)
    ref_loc_0, ref_scale_0 = gated_transition_reference(params_no_u, z_t_1, None)

    def close(a, b):
        return bool(jnp.allclose(a, b, rtol=1e-3, atol=1e-3))

    assert loc_u.shape == (ROWS, Z_DIM) and scale_u.shape == (ROWS, Z_DIM)
    assert loc_0.shape == (ROWS, Z_DIM) and scale_0.shape == (ROWS, Z_DIM)
    assert bool(jnp.all(jnp.isfinite(loc_u))) and bool(jnp.all(jnp.isfinite(scale_u)))
    assert close(loc_u, ref_loc_u) and close(scale_u, ref_scale_u)
    assert close(loc_0, ref_loc_0) and close(scale_0, ref_scale_0)
    print("KERNEL_OK")
</pallas_src>

<mosaic_0001>
module attributes {stable_mosaic.version = 11 : i64} {
  func.func @gated_transition_kernel(%arg0: i32, %arg1: memref<1xf32, #tpu.memory_space<smem>>, %arg2: memref<128x12xf32, #tpu.memory_space<vmem>>, %arg3: memref<12x72xf32, #tpu.memory_space<vmem>>, %arg4: memref<1x72xf32, #tpu.memory_space<vmem>>, %arg5: memref<64x16xf32, #tpu.memory_space<vmem>>, %arg6: memref<1x16xf32, #tpu.memory_space<vmem>>, %arg7: memref<8x8xf32, #tpu.memory_space<vmem>>, %arg8: memref<1x8xf32, #tpu.memory_space<vmem>>, %arg9: memref<128x16xf32, #tpu.memory_space<vmem>>) attributes {dimension_semantics = [#tpu.dimension_semantics<parallel>], iteration_bounds = array<i64: 2>, scalar_prefetch = 0 : i64, scratch_operands = 0 : i64, tpu.core_type = #tpu.core_type<tc>, window_params = [{transform_indices = @transform_0, window_bounds = array<i64: 1>}, {transform_indices = @transform_1, window_bounds = array<i64: 128, 12>}, {pipeline_mode = #tpu.pipeline_mode<synchronous>, transform_indices = @transform_2, window_bounds = array<i64: 12, 72>}, {pipeline_mode = #tpu.pipeline_mode<synchronous>, transform_indices = @transform_3, window_bounds = array<i64: 1, 72>}, {pipeline_mode = #tpu.pipeline_mode<synchronous>, transform_indices = @transform_4, window_bounds = array<i64: 64, 16>}, {pipeline_mode = #tpu.pipeline_mode<synchronous>, transform_indices = @transform_5, window_bounds = array<i64: 1, 16>}, {pipeline_mode = #tpu.pipeline_mode<synchronous>, transform_indices = @transform_6, window_bounds = array<i64: 8, 8>}, {pipeline_mode = #tpu.pipeline_mode<synchronous>, transform_indices = @transform_7, window_bounds = array<i64: 1, 8>}, {transform_indices = @transform_8, window_bounds = array<i64: 128, 16>}]} {
    %c0 = arith.constant 0 : index
    %0 = memref.load %arg1[%c0] : memref<1xf32, #tpu.memory_space<smem>>
    %c0_0 = arith.constant 0 : index
    %c0_1 = arith.constant 0 : index
    %1 = vector.load %arg2[%c0_0, %c0_1] : memref<128x12xf32, #tpu.memory_space<vmem>>, vector<128x12xf32>
    %c0_2 = arith.constant 0 : index
    %c0_3 = arith.constant 0 : index
    %2 = vector.load %arg3[%c0_2, %c0_3] : memref<12x72xf32, #tpu.memory_space<vmem>>, vector<12x72xf32>
    %cst = arith.constant dense<0.000000e+00> : vector<128x72xf32>
    %3 = tpu.matmul %1, %2, %cst {dimension_numbers = #tpu.dot_dimension_numbers<[1], [0], [0], [1], [0, 0, 1, 1], [], []>} : vector<128x12xf32>, vector<12x72xf32>, vector<128x72xf32> -> vector<128x72xf32>
    %c0_4 = arith.constant 0 : index
    %c0_5 = arith.constant 0 : index
    %4 = vector.load %arg4[%c0_4, %c0_5] : memref<1x72xf32, #tpu.memory_space<vmem>>, vector<1x72xf32>
    %5 = vector.broadcast %4 : vector<1x72xf32> to vector<128x72xf32>
    %6 = arith.addf %3, %5 : vector<128x72xf32>
    %7 = vector.extract_strided_slice %6 {offsets = [0, 0], sizes = [128, 64], strides = [1, 1]} : vector<128x72xf32> to vector<128x64xf32>
    %cst_6 = arith.constant 0.000000e+00 : f32
    %8 = vector.broadcast %cst_6 : f32 to vector<128x64xf32>
    %9 = arith.cmpf oge, %7, %8 : vector<128x64xf32>
    %10 = vector.broadcast %0 : f32 to vector<128x64xf32>
    %11 = arith.mulf %10, %7 : vector<128x64xf32>
    %12 = arith.select %9, %7, %11 : vector<128x64xi1>, vector<128x64xf32>
    %13 = vector.extract_strided_slice %6 {offsets = [0, 64], sizes = [128, 8], strides = [1, 1]} : vector<128x72xf32> to vector<128x8xf32>
    %c0_7 = arith.constant 0 : index
    %c0_8 = arith.constant 0 : index
    %14 = vector.load %arg5[%c0_7, %c0_8] : memref<64x16xf32, #tpu.memory_space<vmem>>, vector<64x16xf32>
    %cst_9 = arith.constant dense<0.000000e+00> : vector<128x16xf32>
    %15 = tpu.matmul %12, %14, %cst_9 {dimension_numbers = #tpu.dot_dimension_numbers<[1], [0], [0], [1], [0, 0, 1, 1], [], []>} : vector<128x64xf32>, vector<64x16xf32>, vector<128x16xf32> -> vector<128x16xf32>
    %c0_10 = arith.constant 0 : index
    %c0_11 = arith.constant 0 : index
    %16 = vector.load %arg6[%c0_10, %c0_11] : memref<1x16xf32, #tpu.memory_space<vmem>>, vector<1x16xf32>
    %17 = vector.broadcast %16 : vector<1x16xf32> to vector<128x16xf32>
    %18 = arith.addf %15, %17 : vector<128x16xf32>
    %19 = vector.extract_strided_slice %18 {offsets = [0, 0], sizes = [128, 8], strides = [1, 1]} : vector<128x16xf32> to vector<128x8xf32>
    %20 = arith.negf %19 : vector<128x8xf32>
    %21 = math.exp %20 : vector<128x8xf32>
    %cst_12 = arith.constant 1.000000e+00 : f32
    %22 = vector.broadcast %cst_12 : f32 to vector<128x8xf32>
    %23 = arith.addf %22, %21 : vector<128x8xf32>
    %24 = arith.divf %22, %23 : vector<128x8xf32>
    %25 = vector.extract_strided_slice %18 {offsets = [0, 8], sizes = [128, 8], strides = [1, 1]} : vector<128x16xf32> to vector<128x8xf32>
    %cst_13 = arith.constant 1.000000e+00 : f32
    %26 = vector.broadcast %cst_13 : f32 to vector<128x8xf32>
    %27 = arith.subf %26, %24 : vector<128x8xf32>
    %28 = arith.mulf %27, %13 : vector<128x8xf32>
    %29 = arith.mulf %24, %25 : vector<128x8xf32>
    %30 = arith.addf %28, %29 : vector<128x8xf32>
    %cst_14 = arith.constant 0.000000e+00 : f32
    %31 = vector.broadcast %cst_14 : f32 to vector<128x8xf32>
    %32 = arith.cmpf oge, %25, %31 : vector<128x8xf32>
    %33 = vector.broadcast %0 : f32 to vector<128x8xf32>
    %34 = arith.mulf %33, %25 : vector<128x8xf32>
    %35 = arith.select %32, %25, %34 : vector<128x8xi1>, vector<128x8xf32>
    %c0_15 = arith.constant 0 : index
    %c0_16 = arith.constant 0 : index
    %36 = vector.load %arg7[%c0_15, %c0_16] : memref<8x8xf32, #tpu.memory_space<vmem>>, vector<8x8xf32>
    %cst_17 = arith.constant dense<0.000000e+00> : vector<128x8xf32>
    %37 = tpu.matmul %35, %36, %cst_17 {dimension_numbers = #tpu.dot_dimension_numbers<[1], [0], [0], [1], [0, 0, 1, 1], [], []>} : vector<128x8xf32>, vector<8x8xf32>, vector<128x8xf32> -> vector<128x8xf32>
    %c0_18 = arith.constant 0 : index
    %c0_19 = arith.constant 0 : index
    %38 = vector.load %arg8[%c0_18, %c0_19] : memref<1x8xf32, #tpu.memory_space<vmem>>, vector<1x8xf32>
    %39 = vector.broadcast %38 : vector<1x8xf32> to vector<128x8xf32>
    %40 = arith.addf %37, %39 : vector<128x8xf32>
    %41 = tpu.concatenate %30, %40 in 1 : vector<128x8xf32>, vector<128x8xf32> -> vector<128x16xf32>
    %c0_20 = arith.constant 0 : index
    %c0_21 = arith.constant 0 : index
    %42 = vector.load %arg9[%c0_20, %c0_21] : memref<128x16xf32, #tpu.memory_space<vmem>>, vector<128x16xf32>
    tpu.vector_store %arg9[%c0_20, %c0_21], %41 {strides = array<i32>} : memref<128x16xf32, #tpu.memory_space<vmem>>, vector<128x16xf32>,
    return
  }
  func.func @transform_0(%arg0: i32) -> i32 {
    %c0_i32 = arith.constant 0 : i32
    %c0_i32_0 = arith.constant 0 : i32
    return %c0_i32 : i32
  }
  func.func @transform_1(%arg0: i32) -> (i32, i32) {
    %c0_i32 = arith.constant 0 : i32
    %c0_i32_0 = arith.constant 0 : i32
    return %arg0, %c0_i32 : i32, i32
  }
  func.func @transform_2(%arg0: i32) -> (i32, i32) {
    %c0_i32 = arith.constant 0 : i32
    %c0_i32_0 = arith.constant 0 : i32
    %c0_i32_1 = arith.constant 0 : i32
    return %c0_i32, %c0_i32_0 : i32, i32
  }
  func.func @transform_3(%arg0: i32) -> (i32, i32) {
    %c0_i32 = arith.constant 0 : i32
    %c0_i32_0 = arith.constant 0 : i32
    %c0_i32_1 = arith.constant 0 : i32
    return %c0_i32, %c0_i32_0 : i32, i32
  }
  func.func @transform_4(%arg0: i32) -> (i32, i32) {
    %c0_i32 = arith.constant 0 : i32
    %c0_i32_0 = arith.constant 0 : i32
    %c0_i32_1 = arith.constant 0 : i32
    return %c0_i32, %c0_i32_0 : i32, i32
  }
  func.func @transform_5(%arg0: i32) -> (i32, i32) {
    %c0_i32 = arith.constant 0 : i32
    %c0_i32_0 = arith.constant 0 : i32
    %c0_i32_1 = arith.constant 0 : i32
    return %c0_i32, %c0_i32_0 : i32, i32
  }
  func.func @transform_6(%arg0: i32) -> (i32, i32) {
    %c0_i32 = arith.constant 0 : i32
    %c0_i32_0 = arith.constant 0 : i32
    %c0_i32_1 = arith.constant 0 : i32
    return %c0_i32, %c0_i32_0 : i32, i32
  }
  func.func @transform_7(%arg0: i32) -> (i32, i32) {
    %c0_i32 = arith.constant 0 : i32
    %c0_i32_0 = arith.constant 0 : i32
    %c0_i32_1 = arith.constant 0 : i32
    return %c0_i32, %c0_i32_0 : i32, i32
  }
  func.func @transform_8(%arg0: i32) -> (i32, i32) {
    %c0_i32 = arith.constant 0 : i32
    %c0_i32_0 = arith.constant 0 : i32
    return %arg0, %c0_i32 : i32, i32
  }
}

</mosaic_0001>

<bundles_post_ra>
// kernel: gated_transition_forward.1
= control target key start
LH: loop header
LB: loop body
LE: loop exit
PB: predicated region body
PF: predicated region fallthrough
CT: control target
= control target key end

     0   :  { %s1907_s29 = smov 0   ;;  %s2511_s0 = inlined_call_operand.<no memory space> [shape: f32[1], index: 0, kind: input, shape index: {}]   ;;  %s2512_s1 = inlined_call_operand.vmem [shape: f32[256,12], index: 1, kind: input, shape index: {}]   ;;  %s2513_s2 = inlined_call_operand.vmem [shape: f32[12,72], index: 2, kind: input, shape index: {}]   ;;  %s2514_s3 = inlined_call_operand.vmem [shape: f32[1,72], index: 3, kind: input, shape index: {}]   ;;  %s2515_s4 = inlined_call_operand.vmem [shape: f32[64,16], index: 4, kind: input, shape index: {}]   ;;  %s2516_s5 = inlined_call_operand.vmem [shape: f32[1,16], index: 5, kind: input, shape index: {}]   ;;  %s2517_s6 = inlined_call_operand.vmem [shape: f32[8,8], index: 6, kind: input, shape index: {}]   ;;  %s2518_s7 = inlined_call_operand.vmem [shape: f32[1,8], index: 7, kind: input, shape index: {}]   ;;  %s2519_s8 = inlined_call_operand.vmem [shape: f32[256,16], index: 8, kind: output, shape index: {}]  }
   0x1   :  { %13 = sst [smem:[#allocation2]] %s2511_s0 }
   0x2 LB: > { %s1515_s30 = sadd.s32 4294967295, %s1853_s29   ;;  %p1519_p0 = scmp.ge.s32.totalorder %s1853_s29, 1  ;;  %s1853_s29 = sphi %s1907_s29, %s19_s29  }
   0x3   : > { %p264_p1 = scmp.lt.s32.totalorder %s1853_s29, 3 }
   0x5   : > { %p265_p2 = pnand %p1519_p0, %p264_p1 }
   0x6   : > { %v327_v0 = vld [vmem:[%s2513_s2] sm:$0xff] (!%p265_p2)  ;;  %v328_v1 = vld [vmem:[%s2513_s2 + $0x8] sm:$0xf] (!%p265_p2)  ;;  %vm385_vm0 = vcmask (!%p265_p2), 1043456   ;;  %s1520_s12 = sshll.u32 (!%p265_p2), %s1515_s30, 4  ;;  %vm1855_vm1 = vmmov (!%p265_p2), 1  }
   0x7   : > { %268 = sbr.rel (%p265_p2) target bundleno = 935 (0x3a7), region = 52  ;;  %v1747_v2 = vpack.c.bf16 (!%p265_p2), %v328_v1, %v327_v0  ;;  %vm1748_vm2 = vmpackc.low (!%p265_p2), %vm385_vm0, %vm1855_vm1  ;;  %p299_p3 = scmp.lt.s32.totalorder (!%p265_p2), %s1520_s12, 31  ;;  %v583_v3 = vld [vmem:[%s2515_s4] sm:$0xff] (!%p265_p2)  ;;  %v584_v4 = vld [vmem:[%s2515_s4 + $0x8] sm:$0xff] (!%p265_p2)  ;;  %vm336_vm3 = vcmask (!%p265_p2), 97280   ;;  %vm598_vm6 = vcmask (!%p265_p2), 523264  }
   0x8   : > { %v1753_v5 = vpack.c.bf16 (!%p265_p2), %v584_v4, %v583_v3  ;;  %v585_v6 = vld [vmem:[%s2515_s4 + $0x10] sm:$0xff] (!%p265_p2)  ;;  %v586_v7 = vld [vmem:[%s2515_s4 + $0x18] sm:$0xff] (!%p265_p2)  ;;  %v587_v13 = vld [vmem:[%s2515_s4 + $0x20] sm:$0xff] (!%p265_p2)  ;;  %s310_s11 = sld [smem:[#allocation2]] (!%p265_p2)  ;;  %s1857_s21 = smov (!%p265_p2), 64  }
   0x9   : > { %1749 = vmatprep.subr.msk.bf16.mxu0 (!%p265_p2), %vm1748_vm2, %v1747_v2  ;;  %1769 = vmatprep.subr.msk.bf16.mxu1 (!%p265_p2), %vm1748_vm2, %v1747_v2  ;;  %v1757_v12 = vpack.c.bf16 (!%p265_p2), %v586_v7, %v585_v6  ;;  %v588_v14 = vld [vmem:[%s2515_s4 + $0x28] sm:$0xff] (!%p265_p2)  ;;  %v589_v28 = vld [vmem:[%s2515_s4 + $0x30] sm:$0xff] (!%p265_p2)  ;;  %v590_v29 = vld [vmem:[%s2515_s4 + $0x38] sm:$0xff] (!%p265_p2)  ;;  %s1858_s24 = smov (!%p265_p2), 8  }
   0xa   : > { %1752 = vmatpush3.bf16.msk.msra.mxu0 (!%p265_p2), %vm1748_vm2, %v1747_v2  ;;  %1770 = vmatpush3.bf16.msk.msra.mxu1 (!%p265_p2), %vm1748_vm2, %v1747_v2  ;;  %v1761_v21 = vpack.c.bf16 (!%p265_p2), %v588_v14, %v587_v13  ;;  %v1765_v30 = vpack.c.bf16 (!%p265_p2), %v590_v29, %v589_v28  ;;  %v1990_v31 = vld [vmem:[%s2514_s3] ss:$0 sm:$0xff] (!%p265_p2) }
   0xb   : > { %1754 = vmatprep.subr.bf16.mxu1 (!%p265_p2), %v1753_v5 }
   0xe   : > { %s2521_s12 = smov (!%p299_p3, %s1520_s12), 31  ;;  %v1992_v33 = vstv %s310_s11 }
   0xf   : > { %s1521_s17 = sshll.u32 %s2521_s12, 3 }
  0x10   : > { %s1935_s20 = scalar_lea.vmem %s2512_s1, %s1521_s17  ;;  %s2430_s27 = scalar_lea.vmem %s2519_s8, %s1521_s17 }
  0x11   : > { %v311_v8 = vld [vmem:[%s1935_s20] sm:$0xff]  ;;  %v312_v9 = vld [vmem:[%s1935_s20 + $0x8] sm:$0xff]  ;;  %v313_v10 = vld [vmem:[%s1935_s20 + $0x10] sm:$0xff] }
  0x12   : > { %1657 = vmatprep.mubr.msk.f32.mxu0 %vm336_vm3, %v311_v8  ;;  %v319_v11 = vld [vmem:[%s1935_s20 + $0x40] sm:$0xff]  ;;  %v314_v15 = vld [vmem:[%s1935_s20 + $0x18] sm:$0xff]  ;;  %v320_v16 = vld [vmem:[%s1935_s20 + $0x48] sm:$0xff] }
  0x13   : > { %1658 = vmatmul.mubr.msk.f32.vlgmr.msra.gmra.mrb[0].mxu0 %vm336_vm3, %v312_v9  ;;  %1669 = vmatprep.mubr.msk.f32.mxu1 %vm336_vm3, %v319_v11  ;;  %v321_v17 = vld [vmem:[%s1935_s20 + $0x50] sm:$0xff]  ;;  %v315_v18 = vld [vmem:[%s1935_s20 + $0x20] sm:$0xff]  ;;  %v322_v19 = vld [vmem:[%s1935_s20 + $0x58] sm:$0xff] }
  0x14   : > { %1660 = vmatprep.mubr.msk.f32.mxu0 %vm336_vm3, %v313_v10  ;;  %1670 = vmatmul.mubr.msk.f32.vlgmr.msra.gmra.mrb[0].mxu1 %vm336_vm3, %v320_v16  ;;  %v323_v20 = vld [vmem:[%s1935_s20 + $0x60] sm:$0xff]  ;;  %v316_v22 = vld [vmem:[%s1935_s20 + $0x28] sm:$0xff]  ;;  %v317_v23 = vld [vmem:[%s1935_s20 + $0x30] sm:$0xff] }
  0x15   : > { %1672 = vmatprep.mubr.msk.f32.mxu1 %vm336_vm3, %v321_v17  ;;  %1756 = vmatpush3.bf16.msra.mxu1 %v1753_v5  ;;  %v324_v24 = vld [vmem:[%s1935_s20 + $0x68] sm:$0xff]  ;;  %v325_v25 = vld [vmem:[%s1935_s20 + $0x70] sm:$0xff]  ;;  %v318_v26 = vld [vmem:[%s1935_s20 + $0x38] sm:$0xff] }
  0x16   : > { %1758 = vmatprep.subr.bf16.mxu1 %v1757_v12  ;;  %v326_v27 = vld [vmem:[%s1935_s20 + $0x78] sm:$0xff]  ;;  %s1856_s20 = smov 120  }
  0x17   : > { %1661 = vmatmul.mubr.msk.f32.gmra.mrb[2].mxu0 %vm336_vm3, %v314_v15 }
  0x18   : > { %1663 = vmatprep.mubr.msk.f32.mxu0 %vm336_vm3, %v315_v18  ;;  %1673 = vmatmul.mubr.msk.f32.gmra.mrb[2].mxu1 %vm336_vm3, %v322_v19 }
  0x19   : > { %1675 = vmatprep.mubr.msk.f32.mxu1 %vm336_vm3, %v323_v20  ;;  %1760 = vmatpush3.bf16.msra.mxu1 %v1757_v12 }
  0x1a   : > { %1762 = vmatprep.subr.bf16.mxu1 %v1761_v21 }
  0x1b   : > { %1664 = vmatmul.mubr.msk.f32.gmra.mrb[4].mxu0 %vm336_vm3, %v316_v22 }
  0x1c   : > { %1666 = vmatprep.mubr.msk.f32.mxu0 %vm336_vm3, %v317_v23  ;;  %1676 = vmatmul.mubr.msk.f32.gmra.mrb[4].mxu1 %vm336_vm3, %v324_v24 }
  0x1d   : > { %1678 = vmatprep.mubr.msk.f32.mxu1 %vm336_vm3, %v325_v25  ;;  %1764 = vmatpush3.bf16.msra.mxu1 %v1761_v21 }
  0x1e   : > { %1766 = vmatprep.subr.bf16.mxu1 %v1765_v30 }
  0x1f   : > { %1667 = vmatmul.mubr.msk.f32.gmra.mrb[6].mxu0 %vm336_vm3, %v318_v26 }
  0x20   : > { %1679 = vmatmul.mubr.msk.f32.gmra.mrb[6].mxu1 %vm336_vm3, %v326_v27 }
  0x21   : > { %1768 = vmatpush3.bf16.msra.mxu1 %v1765_v30 }
  0xe6   : > { %v1659_v32 = vpop.f32.mrb[0].mxu0 }
  0xe7   : > { %v1995_v34 = vadd.f32 %v1659_v32, %v1990_v31  ;;  %v455_v35 = vpop.f32.mrb[1].mxu0  ;;  %v1671_v37 = vpop.f32.mrb[0].mxu1 }
  0xe8   : > { %v1998_v36 = vadd.f32 %v1990_v31, %v455_v35  ;;  %v495_v39 = vpop.f32.mrb[1].mxu1  ;;  %v2045_v1 = vadd.f32 %v1671_v37, %v1990_v31  ;;  %v1128_v35 = vld [vmem:[%s2517_s6] sm:$0xff] }
  0xe9   : > { %v552_v38 = vmul.f32 %v1992_v33, %v1995_v34  ;;  %vm535_vm4 = vcmp.ge.f32.partialorder %v1995_v34, 0.0  ;;  %v2030_v56 = vadd.f32 %v1990_v31, %v495_v39  ;;  %1721 = vmatprep.subr.mxu0 %v1128_v35  ;;  %v2128_v37 = vld [vmem:[%s2516_s5] ss:$0 sm:$0xff] }
  0xea   : > { %v1662_v40 = vpop.f32.mrb[2].mxu0  ;;  %vm534_vm5 = vcmp.ge.f32.partialorder %v1998_v36, 0.0  ;;  %v551_v41 = vmul.f32 %v1992_v33, %v1998_v36  ;;  %vm543_vm14 = vcmp.ge.f32.partialorder %v2045_v1, 0.0  ;;  %v560_v13 = vmul.f32 %v1992_v33, %v2045_v1  ;;  %1722 = vmatpush3.msra.mxu0 %v1128_v35 }
  0xeb   : > { %v2007_v42 = vadd.f32 %v1662_v40, %v1990_v31  ;;  %v465_v43 = vpop.f32.mrb[3].mxu0  ;;  %v1674_v46 = vpop.f32.mrb[2].mxu1  ;;  %v568_v47 = vsel %vm535_vm4, %v1995_v34, %v552_v38  ;;  %v559_v6 = vmul.f32 %v1992_v33, %v2030_v56  ;;  %vm542_vm12 = vcmp.ge.f32.partialorder %v2030_v56, 0.0 }
  0xec   : > { %v2010_v44 = vadd.f32 %v1990_v31, %v465_v43  ;;  %v567_v45 = vsel %vm534_vm5, %v1998_v36, %v551_v41  ;;  %v505_v49 = vpop.f32.mrb[3].mxu1  ;;  %v2067_v11 = vadd.f32 %v1674_v46, %v1990_v31  ;;  %v576_v19 = vsel %vm543_vm14, %v2045_v1, %v560_v13 }
  0xed   : > { %1697 = vmatprep.mubr.msk.f32.mxu1 %vm598_vm6, %v567_v45  ;;  %v554_v48 = vmul.f32 %v1992_v33, %v2007_v42  ;;  %vm537_vm8 = vcmp.ge.f32.partialorder %v2007_v42, 0.0  ;;  %v2053_v5 = vadd.f32 %v1990_v31, %v505_v49  ;;  %v575_v15 = vsel %vm542_vm12, %v2030_v56, %v559_v6 }
  0xee   : > { %v1665_v50 = vpop.f32.mrb[4].mxu0  ;;  %1698 = vmatmul.mubr.msk.f32.vlgmr.msra.gmra.mrb[8].mxu1 %vm598_vm6, %v568_v47  ;;  %vm536_vm7 = vcmp.ge.f32.partialorder %v2010_v44, 0.0  ;;  %v553_v51 = vmul.f32 %v1992_v33, %v2010_v44  ;;  %v562_v20 = vmul.f32 %v1992_v33, %v2067_v11  ;;  %vm545_vm0 = vcmp.ge.f32.partialorder %v2067_v11, 0.0 }
  0xef   : > { %v2023_v52 = vadd.f32 %v1665_v50, %v1990_v31  ;;  %v475_v53 = vpop.f32.mrb[5].mxu0  ;;  %v1677_v57 = vpop.f32.mrb[4].mxu1  ;;  %v570_v58 = vsel %vm537_vm8, %v2007_v42, %v554_v48  ;;  %v561_v17 = vmul.f32 %v1992_v33, %v2053_v5  ;;  %vm544_vm15 = vcmp.ge.f32.partialorder %v2053_v5, 0.0 }
  0xf0   : > { %v2026_v54 = vadd.f32 %v1990_v31, %v475_v53  ;;  %v569_v55 = vsel %vm536_vm7, %v2010_v44, %v553_v51  ;;  %v515_v60 = vpop.f32.mrb[5].mxu1  ;;  %v2085_v18 = vadd.f32 %v1677_v57, %v1990_v31  ;;  %v578_v25 = vsel %vm545_vm0, %v2067_v11, %v562_v20 }
  0xf1   : > { %1700 = vmatprep.mubr.msk.f32.mxu1 %vm598_vm6, %v569_v55  ;;  %vm539_vm9 = vcmp.ge.f32.partialorder %v2023_v52, 0.0  ;;  %v556_v59 = vmul.f32 %v1992_v33, %v2023_v52  ;;  %v2076_v16 = vadd.f32 %v1990_v31, %v515_v60  ;;  %v577_v21 = vsel %vm544_vm15, %v2053_v5, %v561_v17 }
  0xf2   : > { %v1668_v61 = vpop.f32.mrb[6].mxu0  ;;  %1701 = vmatmul.mubr.msk.f32.gmra.mrb[10].mxu1 %vm598_vm6, %v570_v58  ;;  %vm538_vm10 = vcmp.ge.f32.partialorder %v2026_v54, 0.0  ;;  %v555_v62 = vmul.f32 %v1992_v33, %v2026_v54  ;;  %v564_v26 = vmul.f32 %v1992_v33, %v2085_v18  ;;  %vm547_vm2 = vcmp.ge.f32.partialorder %v2085_v18, 0.0 }
  0xf3   : > { %v2042_v63 = vadd.f32 %v1668_v61, %v1990_v31  ;;  %v485_v0 = vpop.f32.mrb[7].mxu0  ;;  %v572_v2 = vsel %vm539_vm9, %v2023_v52, %v556_v59  ;;  %v1680_v7 = vpop.f32.mrb[6].mxu1  ;;  %v563_v23 = vmul.f32 %v1992_v33, %v2076_v16  ;;  %vm546_vm1 = vcmp.ge.f32.partialorder %v2076_v16, 0.0 }
  0xf4   : > { %v2049_v3 = vadd.f32 %v1990_v31, %v485_v0  ;;  %v571_v4 = vsel %vm538_vm10, %v2026_v54, %v555_v62  ;;  %v525_v9 = vpop.f32.mrb[7].mxu1  ;;  %v2101_v24 = vadd.f32 %v1680_v7, %v1990_v31  ;;  %v580_v29 = vsel %vm547_vm2, %v2085_v18, %v564_v26 }
  0xf5   : > { %1703 = vmatprep.mubr.msk.f32.mxu1 %vm598_vm6, %v571_v4  ;;  %vm541_vm11 = vcmp.ge.f32.partialorder %v2042_v63, 0.0  ;;  %v558_v8 = vmul.f32 %v1992_v33, %v2042_v63  ;;  %v2093_v22 = vadd.f32 %v1990_v31, %v525_v9  ;;  %v579_v27 = vsel %vm546_vm1, %v2076_v16, %v563_v23 }
  0xf6   : > { %1704 = vmatmul.mubr.msk.f32.gmra.mrb[12].mxu1 %vm598_vm6, %v572_v2  ;;  %vm540_vm13 = vcmp.ge.f32.partialorder %v2049_v3, 0.0  ;;  %v557_v10 = vmul.f32 %v1992_v33, %v2049_v3  ;;  %v566_v30 = vmul.f32 %v1992_v33, %v2101_v24  ;;  %vm549_vm4 = vcmp.ge.f32.partialorder %v2101_v24, 0.0 }
  0xf7   : > { %v574_v12 = vsel %vm541_vm11, %v2042_v63, %v558_v8  ;;  %v565_v28 = vmul.f32 %v1992_v33, %v2093_v22  ;;  %vm548_vm3 = vcmp.ge.f32.partialorder %v2093_v22, 0.0 }
  0xf8   : > { %v573_v14 = vsel %vm540_vm13, %v2049_v3, %v557_v10  ;;  %v582_v32 = vsel %vm549_vm4, %v2101_v24, %v566_v30 }
  0xf9   : > { %1706 = vmatprep.mubr.msk.f32.mxu1 %vm598_vm6, %v573_v14  ;;  %v581_v31 = vsel %vm548_vm3, %v2093_v22, %v565_v28 }
  0xfa   : > { %1707 = vmatmul.mubr.msk.f32.gmra.mrb[14].mxu1 %vm598_vm6, %v574_v12 }
  0xfb   : > { %1709 = vmatprep.mubr.msk.f32.mxu1 %vm598_vm6, %v575_v15 }
  0xfe   : > { %1710 = vmatmul.mubr.msk.f32.gmra.mrb[16].mxu1 %vm598_vm6, %v576_v19 }
  0xff   : > { %1712 = vmatprep.mubr.msk.f32.mxu1 %vm598_vm6, %v577_v21 }
 0x102   : > { %1713 = vmatmul.mubr.msk.f32.gmra.mrb[18].mxu1 %vm598_vm6, %v578_v25 }
 0x103   : > { %1715 = vmatprep.mubr.msk.f32.mxu1 %vm598_vm6, %v579_v27 }
 0x106   : > { %1716 = vmatmul.mubr.msk.f32.gmra.mrb[20].mxu1 %vm598_vm6, %v580_v29 }
 0x107   : > { %1718 = vmatprep.mubr.msk.f32.mxu1 %vm598_vm6, %v581_v31 }
 0x10a   : > { %1719 = vmatmul.mubr.msk.f32.gmra.mrb[22].mxu1 %vm598_vm6, %v582_v32 }
 0x1c1   : > { %v1699_v38 = vpop.f32.mrb[8].mxu1 }
 0x1c2   : > { %v2131_v39 = vadd.f32 %v1699_v38, %v2128_v37  ;;  %v713_v40 = vpop.f32.mrb[9].mxu1 }
 0x1c3   : > { %v2134_v41 = vadd.f32 %v2128_v37, %v713_v40 }
 0x1c4   : > { %v1097_v48 = vmul.f32 %v2131_v39, %v1992_v33  ;;  %vm1081_vm6 = vcmp.ge.f32.partialorder %v2131_v39, 0.0 }
 0x1c5   : > { %v1702_v43 = vpop.f32.mrb[10].mxu1  ;;  %vm1080_vm5 = vcmp.ge.f32.partialorder %v2134_v41, 0.0  ;;  %v1096_v45 = vmul.f32 %v2134_v41, %v1992_v33 }
 0x1c6   : > { %v2140_v46 = vadd.f32 %v1702_v43, %v2128_v37  ;;  %v723_v47 = vpop.f32.mrb[11].mxu1  ;;  %v1113_v57 = vsel %vm1081_vm6, %v2131_v39, %v1097_v48  ;;  %vm1442_vm6 = vcmask 130048  }
 0x1c7   : > { %v2145_v49 = vadd.f32 %v2128_v37, %v723_v47  ;;  %v1112_v50 = vsel %vm1080_vm5, %v2134_v41, %v1096_v45  ;;  %vm1184_vm5 = vcmask 64512  }
 0x1c8   : > { %1152 = vrot.lane.b32.xlu0 %v1112_v50, %s1856_s20  ;;  %v1099_v58 = vmul.f32 %v2140_v46, %v1992_v33  ;;  %vm1083_vm8 = vcmp.ge.f32.partialorder %v2140_v46, 0.0 }
 0x1c9   : > { %v1705_v51 = vpop.f32.mrb[12].mxu1  ;;  %vm1082_vm7 = vcmp.ge.f32.partialorder %v2145_v49, 0.0  ;;  %v1098_v53 = vmul.f32 %v2145_v49, %v1992_v33 }
 0x1ca   : > { %v733_v55 = vpop.f32.mrb[13].mxu1  ;;  %v2157_v59 = vadd.f32 %v1705_v51, %v2128_v37  ;;  %v1115_v4 = vsel %vm1083_vm8, %v2140_v46, %v1099_v58 }
 0x1cb   : > { %v2160_v60 = vadd.f32 %v2128_v37, %v733_v55  ;;  %v1114_v61 = vsel %vm1082_vm7, %v2145_v49, %v1098_v53 }
 0x1cc   : > { %1156 = vrot.lane.b32.xlu1 %v1114_v61, %s1856_s20  ;;  %1154 = vrot.lane.b32.xlu0 %v1113_v57, %s1856_s20  ;;  %v1101_v9 = vmul.f32 %v2157_v59, %v1992_v33  ;;  %vm1085_vm10 = vcmp.ge.f32.partialorder %v2157_v59, 0.0 }
 0x1cd   : > { %v1708_v62 = vpop.f32.mrb[14].mxu1  ;;  %vm1084_vm9 = vcmp.ge.f32.partialorder %v2160_v60, 0.0  ;;  %v1100_v0 = vmul.f32 %v2160_v60, %v1992_v33 }
 0x1ce   : > { %v743_v2 = vpop.f32.mrb[15].mxu1  ;;  %v2171_v6 = vadd.f32 %v1708_v62, %v2128_v37  ;;  %v1117_v17 = vsel %vm1085_vm10, %v2157_v59, %v1101_v9 }
 0x1cf   : > { %v2174_v7 = vadd.f32 %v2128_v37, %v743_v2  ;;  %v1116_v8 = vsel %vm1084_vm9, %v2160_v60, %v1100_v0 }
 0x1d0   : > { %1158 = vrot.lane.b32.xlu1 %v1115_v4, %s1856_s20  ;;  %1160 = vrot.lane.b32.xlu0 %v1116_v8, %s1856_s20  ;;  %v1103_v20 = vmul.f32 %v2171_v6, %v1992_v33  ;;  %vm1087_vm12 = vcmp.ge.f32.partialorder %v2171_v6, 0.0 }
 0x1d1   : > { %v1711_v10 = vpop.f32.mrb[16].mxu1  ;;  %vm1086_vm11 = vcmp.ge.f32.partialorder %v2174_v7, 0.0  ;;  %v1102_v12 = vmul.f32 %v2174_v7, %v1992_v33 }
 0x1d2   : > { %v2186_v13 = vadd.f32 %v1711_v10, %v2128_v37  ;;  %v753_v14 = vpop.f32.mrb[17].mxu1  ;;  %v1119_v29 = vsel %vm1087_vm12, %v2171_v6, %v1103_v20 }
 0x1d3   : > { %v2189_v15 = vadd.f32 %v2128_v37, %v753_v14  ;;  %v1118_v19 = vsel %vm1086_vm11, %v2174_v7, %v1102_v12 }
 0x1d4   : > { %1162 = vrot.lane.b32.xlu1 %v1117_v17, %s1856_s20  ;;  %1164 = vrot.lane.b32.xlu0 %v1118_v19, %s1856_s20  ;;  %v1105_v27 = vmul.f32 %v2186_v13, %v1992_v33  ;;  %vm1089_vm14 = vcmp.ge.f32.partialorder %v2186_v13, 0.0 }
 0x1d5   : > { %v1714_v21 = vpop.f32.mrb[18].mxu1  ;;  %vm1088_vm13 = vcmp.ge.f32.partialorder %v2189_v15, 0.0  ;;  %v1104_v23 = vmul.f32 %v2189_v15, %v1992_v33 }
 0x1d6   : > { %v2202_v25 = vadd.f32 %v1714_v21, %v2128_v37  ;;  %v763_v26 = vpop.f32.mrb[19].mxu1  ;;  %v1121_v38 = vsel %vm1089_vm14, %v2186_v13, %v1105_v27 }
 0x1d7   : > { %v2207_v28 = vadd.f32 %v2128_v37, %v763_v26  ;;  %v1120_v30 = vsel %vm1088_vm13, %v2189_v15, %v1104_v23 }
 0x1d8   : > { %1166 = vrot.lane.b32.xlu1 %v1119_v29, %s1856_s20  ;;  %1168 = vrot.lane.b32.xlu0 %v1120_v30, %s1856_s20  ;;  %v1107_v40 = vmul.f32 %v2202_v25, %v1992_v33  ;;  %vm1091_vm0 = vcmp.ge.f32.partialorder %v2202_v25, 0.0 }
 0x1d9   : > { %v1717_v31 = vpop.f32.mrb[20].mxu1  ;;  %vm1090_vm15 = vcmp.ge.f32.partialorder %v2207_v28, 0.0  ;;  %v1106_v32 = vmul.f32 %v2207_v28, %v1992_v33 }
 0x1da   : > { %v773_v35 = vpop.f32.mrb[21].mxu1  ;;  %v2221_v43 = vadd.f32 %v1717_v31, %v2128_v37  ;;  %v1123_v53 = vsel %vm1091_vm0, %v2202_v25, %v1107_v40 }
 0x1db   : > { %v2224_v45 = vadd.f32 %v2128_v37, %v773_v35  ;;  %v1122_v47 = vsel %vm1090_vm15, %v2207_v28, %v1106_v32 }
 0x1dc   : > { %1170 = vrot.lane.b32.xlu1 %v1121_v38, %s1856_s20  ;;  %1172 = vrot.lane.b32.xlu0 %v1122_v47, %s1856_s20  ;;  %v1109_v61 = vmul.f32 %v2221_v43, %v1992_v33  ;;  %vm1093_vm2 = vcmp.ge.f32.partialorder %v2221_v43, 0.0 }
 0x1dd   : > { %v1720_v48 = vpop.f32.mrb[22].mxu1  ;;  %vm1092_vm1 = vcmp.ge.f32.partialorder %v2224_v45, 0.0  ;;  %v1108_v50 = vmul.f32 %v2224_v45, %v1992_v33 }
 0x1de   : > { %v783_v51 = vpop.f32.mrb[23].mxu1  ;;  %v2235_v55 = vadd.f32 %v1720_v48, %v2128_v37  ;;  %v1125_v0 = vsel %vm1093_vm2, %v2221_v43, %v1109_v61 }
 0x1df   : > { %v2238_v57 = vadd.f32 %v2128_v37, %v783_v51  ;;  %v1124_v58 = vsel %vm1092_vm1, %v2224_v45, %v1108_v50 }
 0x1e0   : > { %1174 = vrot.lane.b32.xlu1 %v1123_v53, %s1856_s20  ;;  %1176 = vrot.lane.b32.xlu0 %v1124_v58, %s1856_s20  ;;  %v1111_v2 = vmul.f32 %v2235_v55, %v1992_v33  ;;  %vm1095_vm4 = vcmp.ge.f32.partialorder %v2235_v55, 0.0 }
 0x1e1   : > { %vm1094_vm3 = vcmp.ge.f32.partialorder %v2238_v57, 0.0  ;;  %v1110_v62 = vmul.f32 %v2238_v57, %v1992_v33 }
 0x1e2   : > { %v1127_v4 = vsel %vm1095_vm4, %v2235_v55, %v1111_v2 }
 0x1e3   : > { %v1126_v37 = vsel %vm1094_vm3, %v2238_v57, %v1110_v62 }
 0x1e4   : > { %1178 = vrot.lane.b32.xlu1 %v1125_v0, %s1856_s20  ;;  %1180 = vrot.lane.b32.xlu0 %v1126_v37, %s1856_s20 }
 0x1e8   : > { %1182 = vrot.lane.b32.xlu1 %v1127_v4, %s1856_s20  ;;  %920 = vrot.lane.b32.xlu0 %v1998_v36, %s1857_s21 }
 0x1ec   : > { %922 = vrot.lane.b32.xlu1 %v1995_v34, %s1857_s21  ;;  %924 = vrot.lane.b32.xlu0 %v2010_v44, %s1857_s21 }
 0x1f0   : > { %926 = vrot.lane.b32.xlu1 %v2007_v42, %s1857_s21  ;;  %928 = vrot.lane.b32.xlu0 %v2026_v54, %s1857_s21 }
 0x1f4   : > { %930 = vrot.lane.b32.xlu1 %v2023_v52, %s1857_s21  ;;  %932 = vrot.lane.b32.xlu0 %v2049_v3, %s1857_s21 }
 0x1f8   : > { %934 = vrot.lane.b32.xlu1 %v2042_v63, %s1857_s21  ;;  %936 = vrot.lane.b32.xlu0 %v2030_v56, %s1857_s21 }
 0x1fc   : > { %938 = vrot.lane.b32.xlu1 %v2045_v1, %s1857_s21  ;;  %940 = vrot.lane.b32.xlu0 %v2053_v5, %s1857_s21 }
 0x200   : > { %942 = vrot.lane.b32.xlu1 %v2067_v11, %s1857_s21  ;;  %944 = vrot.lane.b32.xlu0 %v2076_v16, %s1857_s21 }
 0x204   : > { %946 = vrot.lane.b32.xlu1 %v2085_v18, %s1857_s21  ;;  %948 = vrot.lane.b32.xlu0 %v2093_v22, %s1857_s21 }
 0x208   : > { %950 = vrot.lane.b32.xlu1 %v2101_v24, %s1857_s21  ;;  %1000 = vrot.lane.b32.xlu0 %v2134_v41, %s1856_s20  ;;  %v1575_v24 = vld [vmem:[%s2518_s7] ss:$0 sm:$0xff] }
 0x20c   : > { %1002 = vrot.lane.b32.xlu1 %v2131_v39, %s1856_s20  ;;  %1004 = vrot.lane.b32.xlu0 %v2145_v49, %s1856_s20 }
 0x210   : > { %1006 = vrot.lane.b32.xlu1 %v2140_v46, %s1856_s20  ;;  %1008 = vrot.lane.b32.xlu0 %v2160_v60, %s1856_s20 }
 0x214   : > { %1010 = vrot.lane.b32.xlu1 %v2157_v59, %s1856_s20  ;;  %1012 = vrot.lane.b32.xlu0 %v2174_v7, %s1856_s20 }
 0x218   : > { %1014 = vrot.lane.b32.xlu1 %v2171_v6, %s1856_s20  ;;  %1016 = vrot.lane.b32.xlu0 %v2189_v15, %s1856_s20 }
 0x21c   : > { %1018 = vrot.lane.b32.xlu1 %v2186_v13, %s1856_s20  ;;  %1020 = vrot.lane.b32.xlu0 %v2207_v28, %s1856_s20 }
 0x220   : > { %1022 = vrot.lane.b32.xlu1 %v2202_v25, %s1856_s20  ;;  %1024 = vrot.lane.b32.xlu0 %v2224_v45, %s1856_s20 }
 0x224   : > { %1026 = vrot.lane.b32.xlu1 %v2221_v43, %s1856_s20  ;;  %1028 = vrot.lane.b32.xlu0 %v2238_v57, %s1856_s20 }
 0x228   : > { %1030 = vrot.lane.b32.xlu1 %v2235_v55, %s1856_s20 }
 0x23a   : > { %v1153_v33 = vpop.permute.xlu0 %1152 }
 0x23b   : > { %1723 = vmatprep.mubr.msk.f32.mxu0 %vm1184_vm5, %v1153_v33 }
 0x23e   : > { %v1157_v34 = vpop.permute.xlu1 %1156  ;;  %v1155_v36 = vpop.permute.xlu0 %1154 }
 0x23f   : > { %1724 = vmatmul.mubr.msk.f32.vlgmr.msra.gmra.mrb[8].mxu0 %vm1184_vm5, %v1155_v36 }
 0x240   : > { %1726 = vmatprep.mubr.msk.f32.mxu0 %vm1184_vm5, %v1157_v34 }
 0x242   : > { %v1159_v42 = vpop.permute.xlu1 %1158  ;;  %v1161_v44 = vpop.permute.xlu0 %1160 }
 0x243   : > { %1727 = vmatmul.mubr.msk.f32.gmra.mrb[10].mxu0 %vm1184_vm5, %v1159_v42 }
 0x244   : > { %1729 = vmatprep.mubr.msk.f32.mxu0 %vm1184_vm5, %v1161_v44 }
 0x246   : > { %v1163_v52 = vpop.permute.xlu1 %1162  ;;  %v1165_v54 = vpop.permute.xlu0 %1164 }
 0x247   : > { %1730 = vmatmul.mubr.msk.f32.gmra.mrb[12].mxu0 %vm1184_vm5, %v1163_v52 }
 0x248   : > { %1732 = vmatprep.mubr.msk.f32.mxu0 %vm1184_vm5, %v1165_v54 }
 0x24a   : > { %v1167_v56 = vpop.permute.xlu1 %1166  ;;  %v1169_v63 = vpop.permute.xlu0 %1168 }
 0x24b   : > { %1733 = vmatmul.mubr.msk.f32.gmra.mrb[14].mxu0 %vm1184_vm5, %v1167_v56 }
 0x24c   : > { %1735 = vmatprep.mubr.msk.f32.mxu0 %vm1184_vm5, %v1169_v63 }
 0x24e   : > { %v1171_v1 = vpop.permute.xlu1 %1170  ;;  %v1173_v3 = vpop.permute.xlu0 %1172 }
 0x24f   : > { %1736 = vmatmul.mubr.msk.f32.gmra.mrb[16].mxu0 %vm1184_vm5, %v1171_v1 }
 0x250   : > { %1738 = vmatprep.mubr.msk.f32.mxu0 %vm1184_vm5, %v1173_v3 }
 0x252   : > { %v1175_v5 = vpop.permute.xlu1 %1174  ;;  %v1177_v11 = vpop.permute.xlu0 %1176 }
 0x253   : > { %1739 = vmatmul.mubr.msk.f32.gmra.mrb[18].mxu0 %vm1184_vm5, %v1175_v5 }
 0x254   : > { %1741 = vmatprep.mubr.msk.f32.mxu0 %vm1184_vm5, %v1177_v11 }
 0x256   : > { %v1179_v16 = vpop.permute.xlu1 %1178  ;;  %v1181_v18 = vpop.permute.xlu0 %1180 }
 0x257   : > { %1742 = vmatmul.mubr.msk.f32.gmra.mrb[20].mxu0 %vm1184_vm5, %v1179_v16 }
 0x258   : > { %1744 = vmatprep.mubr.msk.f32.mxu0 %vm1184_vm5, %v1181_v18 }
 0x25a   : > { %v1183_v22 = vpop.permute.xlu1 %1182  ;;  %v2338_v61 = vpop.permute.xlu0 %920 }
 0x25b   : > { %1745 = vmatmul.mubr.msk.f32.gmra.mrb[22].mxu0 %vm1184_vm5, %v1183_v22 }
 0x25e   : > { %v2335_v58 = vpop.permute.xlu1 %922  ;;  %v2345_v42 = vpop.permute.xlu0 %924 }
 0x262   : > { %v2343_v33 = vpop.permute.xlu1 %926  ;;  %v2351_v54 = vpop.permute.xlu0 %928 }
 0x266   : > { %v2349_v52 = vpop.permute.xlu1 %930  ;;  %v2355_v63 = vpop.permute.xlu0 %932 }
 0x26a   : > { %v2353_v56 = vpop.permute.xlu1 %934  ;;  %v2359_v3 = vpop.permute.xlu0 %936 }
 0x26e   : > { %v2357_v1 = vpop.permute.xlu1 %938  ;;  %v2363_v11 = vpop.permute.xlu0 %940 }
 0x272   : > { %v2361_v5 = vpop.permute.xlu1 %942  ;;  %v2367_v18 = vpop.permute.xlu0 %944 }
 0x276   : > { %v2365_v16 = vpop.permute.xlu1 %946 }
 0x27a   : > { %v2369_v22 = vpop.permute.xlu1 %950 }
 0x312   : > { %v1725_v8 = vpop.f32.mrb[8].mxu0 }
 0x313   : > { %v1289_v9 = vadd.f32 %v1725_v8, %v1575_v24  ;;  %v1283_v10 = vpop.f32.mrb[9].mxu0  ;;  %v2373_v8 = vpop.permute.xlu1 %1002 }
 0x314   : > { %v1284_v12 = vadd.f32 %v1575_v24, %v1283_v10 }
 0x315   : > { %1380 = vrot.lane.b32.xlu1 %v1289_v9, %s1858_s24 }
 0x316   : > { %v1728_v14 = vpop.f32.mrb[10].mxu0  ;;  %1378 = vrot.lane.b32.xlu0 %v1284_v12, %s1858_s24  ;;  %v1560_v12 = vmul.f32 -1.442695, %v2131_v39  ;;  %v1563_v39 = vmul.f32 -1.442695, %v2160_v60 }
 0x317   : > { %v1299_v17 = vadd.f32 %v1728_v14, %v1575_v24  ;;  %v1293_v19 = vpop.f32.mrb[11].mxu0  ;;  %v2377_v10 = vpop.permute.xlu1 %1006 }
 0x318   : > { %v1294_v20 = vadd.f32 %v1575_v24, %v1293_v19  ;;  %v1562_v19 = vmul.f32 -1.442695, %v2140_v46  ;;  %1783 = vpow2.f32 %v1560_v12 }
 0x319   : > { %1384 = vrot.lane.b32.xlu1 %v1299_v17, %s1858_s24  ;;  %v1559_v17 = vmul.f32 -1.442695, %v2134_v41  ;;  %v1566_v41 = vmul.f32 -1.442695, %v2171_v6 }
 0x31a   : > { %1382 = vrot.lane.b32.xlu0 %v1294_v20, %s1858_s24  ;;  %v1731_v21 = vpop.f32.mrb[12].mxu0  ;;  %v1561_v20 = vmul.f32 -1.442695, %v2145_v49  ;;  %v1565_v49 = vmul.f32 -1.442695, %v2174_v7 }
 0x31b   : > { %v1309_v23 = vadd.f32 %v1731_v21, %v1575_v24  ;;  %v1303_v26 = vpop.f32.mrb[13].mxu0  ;;  %1785 = vpow2.f32 %v1559_v17  ;;  %v2385_v21 = vpop.permute.xlu1 %1010  ;;  %v1570_v7 = vmul.f32 -1.442695, %v2202_v25 }
 0x31c   : > { %v1304_v27 = vadd.f32 %v1575_v24, %v1303_v26  ;;  %1787 = vpow2.f32 %v1562_v19  ;;  %v1564_v26 = vmul.f32 -1.442695, %v2157_v59  ;;  %v1568_v59 = vmul.f32 -1.442695, %v2186_v13 }
 0x31d   : > { %1388 = vrot.lane.b32.xlu1 %v1309_v23, %s1858_s24  ;;  %1789 = vpow2.f32 %v1561_v20 }
 0x31e   : > { %1386 = vrot.lane.b32.xlu0 %v1304_v27, %s1858_s24  ;;  %v1734_v29 = vpop.f32.mrb[14].mxu0  ;;  %1791 = vpow2.f32 %v1564_v26 }
 0x31f   : > { %v1319_v30 = vadd.f32 %v1734_v29, %v1575_v24  ;;  %v1313_v31 = vpop.f32.mrb[15].mxu0  ;;  %v2391_v27 = vpop.permute.xlu1 %1014  ;;  %1793 = vpow2.f32 %v1563_v39 }
 0x320   : > { %v1314_v32 = vadd.f32 %v1575_v24, %v1313_v31  ;;  %v1567_v31 = vmul.f32 -1.442695, %v2189_v15  ;;  %1795 = vpow2.f32 %v1566_v41 }
 0x321   : > { %1392 = vrot.lane.b32.xlu1 %v1319_v30, %s1858_s24  ;;  %1797 = vpow2.f32 %v1565_v49 }
 0x322   : > { %1390 = vrot.lane.b32.xlu0 %v1314_v32, %s1858_s24  ;;  %v1737_v35 = vpop.f32.mrb[16].mxu0  ;;  %v1784_v29 = vpop.eup %1783  ;;  %1799 = vpow2.f32 %v1567_v31 }
 0x323   : > { %v1329_v38 = vadd.f32 %v1737_v35, %v1575_v24  ;;  %v1323_v40 = vpop.f32.mrb[17].mxu0  ;;  %v841_v60 = vadd.f32 1.0, %v1784_v29  ;;  %v2399_v35 = vpop.permute.xlu1 %1018  ;;  %1801 = vpow2.f32 %v1568_v59 }
 0x324   : > { %v1324_v47 = vadd.f32 %v1575_v24, %v1323_v40 }
 0x325   : > { %1396 = vrot.lane.b32.xlu1 %v1329_v38, %s1858_s24  ;;  %v1786_v30 = vpop.eup %1785  ;;  %1803 = vrcp.f32 %v841_v60 }
 0x326   : > { %1394 = vrot.lane.b32.xlu0 %v1324_v47, %s1858_s24  ;;  %v1740_v48 = vpop.f32.mrb[18].mxu0  ;;  %v1788_v32 = vpop.eup %1787  ;;  %v840_v38 = vadd.f32 1.0, %v1786_v30 }
 0x327   : > { %v1339_v50 = vadd.f32 %v1740_v48, %v1575_v24  ;;  %v1333_v51 = vpop.f32.mrb[19].mxu0  ;;  %v1790_v6 = vpop.eup %1789  ;;  %v843_v47 = vadd.f32 1.0, %v1788_v32  ;;  %v1569_v48 = vmul.f32 -1.442695, %v2207_v28 }
 0x328   : > { %v1334_v53 = vadd.f32 %v1575_v24, %v1333_v51  ;;  %v1792_v15 = vpop.eup %1791  ;;  %1805 = vrcp.f32 %v840_v38  ;;  %v1572_v51 = vmul.f32 -1.442695, %v2221_v43  ;;  %v1573_v43 = vmul.f32 -1.442695, %v2238_v57 }
 0x329   : > { %1400 = vrot.lane.b32.xlu1 %v1339_v50, %s1858_s24  ;;  %v842_v50 = vadd.f32 1.0, %v1790_v6  ;;  %v1794_v13 = vpop.eup %1793  ;;  %1807 = vrcp.f32 %v843_v47 }
 0x32a   : > { %1398 = vrot.lane.b32.xlu0 %v1334_v53, %s1858_s24  ;;  %v1743_v62 = vpop.f32.mrb[20].mxu0  ;;  %v2406_v53 = vpop.permute.xlu1 %1022  ;;  %1809 = vpow2.f32 %v1570_v7  ;;  %v844_v28 = vadd.f32 1.0, %v1794_v13 }
 0x32b   : > { %v1349_v0 = vadd.f32 %v1743_v62, %v1575_v24  ;;  %v1343_v37 = vpop.f32.mrb[21].mxu0  ;;  %v1571_v62 = vmul.f32 -1.442695, %v2224_v45  ;;  %1811 = vpow2.f32 %v1569_v48  ;;  %v1796_v25 = vpop.eup %1795 }
 0x32c   : > { %v1344_v2 = vadd.f32 %v1575_v24, %v1343_v37  ;;  %v845_v37 = vadd.f32 1.0, %v1792_v15  ;;  %1813 = vrcp.f32 %v842_v50 }
 0x32d   : > { %1404 = vrot.lane.b32.xlu1 %v1349_v0, %s1858_s24  ;;  %1815 = vpow2.f32 %v1572_v51 }
 0x32e   : > { %1402 = vrot.lane.b32.xlu0 %v1344_v2, %s1858_s24  ;;  %v1746_v4 = vpop.f32.mrb[22].mxu0  ;;  %v1798_v2 = vpop.eup %1797  ;;  %1817 = vpow2.f32 %v1571_v62 }
 0x32f   : > { %v1359_v34 = vadd.f32 %v1746_v4, %v1575_v24  ;;  %v1353_v36 = vpop.f32.mrb[23].mxu0  ;;  %v1574_v4 = vmul.f32 -1.442695, %v2235_v55  ;;  %1819 = vrcp.f32 %v845_v37  ;;  %v846_v12 = vadd.f32 1.0, %v1798_v2 }
 0x330   : > { %v1354_v44 = vadd.f32 %v1575_v24, %v1353_v36  ;;  %v2371_v24 = vpop.permute.xlu0 %948  ;;  %v847_v36 = vadd.f32 1.0, %v1796_v25  ;;  %1821 = vrcp.f32 %v844_v28 }
 0x331   : > { %1408 = vrot.lane.b32.xlu1 %v1359_v34, %s1858_s24  ;;  %v1800_v34 = vpop.eup %1799  ;;  %1823 = vpow2.f32 %v1574_v4 }
 0x332   : > { %1406 = vrot.lane.b32.xlu0 %v1354_v44, %s1858_s24  ;;  %v2413_v44 = vpop.permute.xlu1 %1026  ;;  %v1802_v45 = vpop.eup %1801  ;;  %1825 = vpow2.f32 %v1573_v43  ;;  %v848_v26 = vadd.f32 1.0, %v1800_v34 }
 0x333   : > { %v1804_v19 = vpop.eup %1803  ;;  %1827 = vrcp.f32 %v847_v36  ;;  %v849_v55 = vadd.f32 1.0, %v1802_v45 }
 0x334   : > { %v2375_v9 = vpop.permute.xlu0 %1000  ;;  %v1806_v20 = vpop.eup %1805  ;;  %v889_v57 = vsub.f32 1.0, %v1804_v19  ;;  %1829 = vrcp.f32 %v846_v12  ;;  %v1049_v49 = vmul.f32 %v1804_v19, %v2373_v8 }
 0x335   : > { %v1808_v39 = vpop.eup %1807  ;;  %v888_v30 = vsub.f32 1.0, %v1806_v20  ;;  %v1048_v31 = vmul.f32 %v1806_v20, %v2375_v9  ;;  %1831 = vrcp.f32 %v848_v26 }
 0x336   : > { %v1810_v41 = vpop.eup %1809  ;;  %v2419_v32 = vpop.permute.xlu1 %1030  ;;  %v969_v60 = vmul.f32 %v2335_v58, %v889_v57  ;;  %v891_v7 = vsub.f32 1.0, %v1808_v39  ;;  %1833 = vrcp.f32 %v849_v55  ;;  %v1051_v58 = vmul.f32 %v1808_v39, %v2377_v10 }
 0x337   : > { %v1812_v29 = vpop.eup %1811  ;;  %v968_v47 = vmul.f32 %v2338_v61, %v888_v30  ;;  %v851_v48 = vadd.f32 1.0, %v1810_v41 }
 0x338   : > { %v2380_v14 = vpop.permute.xlu0 %1004  ;;  %v1814_v59 = vpop.eup %1813  ;;  %v850_v8 = vadd.f32 1.0, %v1812_v29  ;;  %v1065_v9 = vadd.f32 %v1049_v49, %v969_v60  ;;  %v971_v25 = vmul.f32 %v2343_v33, %v891_v7 }
 0x339   : > { %v1816_v6 = vpop.eup %1815  ;;  %v890_v13 = vsub.f32 1.0, %v1814_v59  ;;  %v1064_v51 = vadd.f32 %v1048_v31, %v968_v47  ;;  %v1050_v61 = vmul.f32 %v1814_v59, %v2380_v14  ;;  %1835 = vrcp.f32 %v851_v48 }
 0x33a   : > { %v1818_v15 = vpop.eup %1817  ;;  %v853_v28 = vadd.f32 1.0, %v1816_v6  ;;  %1837 = vrcp.f32 %v850_v8  ;;  %v1067_v12 = vadd.f32 %v1051_v58, %v971_v25 }
 0x33b   : > { %v1820_v50 = vpop.eup %1819  ;;  %v970_v34 = vmul.f32 %v2345_v42, %v890_v13  ;;  %v852_v10 = vadd.f32 1.0, %v1818_v15 }
 0x33c   : > { %v2387_v23 = vpop.permute.xlu0 %1008  ;;  %v1822_v37 = vpop.eup %1821  ;;  %v893_v14 = vsub.f32 1.0, %v1820_v50  ;;  %v1053_v33 = vmul.f32 %v1820_v50, %v2385_v21  ;;  %1839 = vrcp.f32 %v853_v28 }
 0x33d   : > { %v1824_v43 = vpop.eup %1823  ;;  %v892_v20 = vsub.f32 1.0, %v1822_v37  ;;  %v1066_v26 = vadd.f32 %v1050_v61, %v970_v34  ;;  %v1052_v42 = vmul.f32 %v1822_v37, %v2387_v23  ;;  %1841 = vrcp.f32 %v852_v10 }
 0x33e   : > { %v1826_v45 = vpop.eup %1825  ;;  %v973_v41 = vmul.f32 %v2349_v52, %v893_v14  ;;  %v855_v21 = vadd.f32 1.0, %v1824_v43 }
 0x33f   : > { %v1828_v19 = vpop.eup %1827  ;;  %v972_v29 = vmul.f32 %v2351_v54, %v892_v20  ;;  %v854_v59 = vadd.f32 1.0, %v1826_v45 }
 0x340   : > { %v2394_v46 = vpop.permute.xlu0 %1012  ;;  %v1830_v55 = vpop.eup %1829  ;;  %v895_v23 = vsub.f32 1.0, %v1828_v19  ;;  %v1069_v60 = vadd.f32 %v1053_v33, %v973_v41  ;;  %v1055_v6 = vmul.f32 %v1828_v19, %v2391_v27  ;;  %1843 = vrcp.f32 %v855_v21 }
 0x341   : > { %v1832_v31 = vpop.eup %1831  ;;  %v894_v47 = vsub.f32 1.0, %v1830_v55  ;;  %v1068_v7 = vadd.f32 %v1052_v42, %v972_v29  ;;  %v1054_v54 = vmul.f32 %v1830_v55, %v2394_v46  ;;  %1845 = vrcp.f32 %v854_v59 }
 0x342   : > { %v1834_v52 = vpop.eup %1833  ;;  %v975_v15 = vmul.f32 %v2353_v56, %v895_v23  ;;  %v896_v56 = vsub.f32 1.0, %v1832_v31 }
 0x343   : > { %v974_v58 = vmul.f32 %v2355_v63, %v894_v47  ;;  %v897_v50 = vsub.f32 1.0, %v1834_v52  ;;  %v1836_v46 = vpop.eup %1835 }
 0x344   : > { %v2401_v40 = vpop.permute.xlu0 %1016  ;;  %v1071_v13 = vadd.f32 %v1055_v6, %v975_v15  ;;  %v1838_v37 = vpop.eup %1837  ;;  %v899_v34 = vsub.f32 1.0, %v1836_v46 }
 0x345   : > { %v1070_v61 = vadd.f32 %v1054_v54, %v974_v58  ;;  %v977_v25 = vmul.f32 %v2357_v1, %v897_v50  ;;  %v898_v1 = vsub.f32 1.0, %v1838_v37 }
 0x346   : > { %v1840_v43 = vpop.eup %1839 }
 0x347   : > { %v978_v20 = vmul.f32 %v2363_v11, %v898_v1 }
 0x348   : > { %v2409_v0 = vpop.permute.xlu0 %1020 }
 0x349   : > { %v1058_v14 = vmul.f32 %v1838_v37, %v2409_v0 }
 0x34c   : > { %v2415_v17 = vpop.permute.xlu0 %1024 }
 0x350   : > { %v2422_v38 = vpop.permute.xlu0 %1028 }
 0x387   : > { %v1381_v62 = vpop.permute.xlu1 %1380 }
 0x388   : > { %v1427_v2 = vsel %vm1184_vm5, %v1065_v9, %v1381_v62  ;;  %v1379_v4 = vpop.permute.xlu0 %1378  ;;  %v1056_v62 = vmul.f32 %v1832_v31, %v2401_v40  ;;  %v1842_v40 = vpop.eup %1841 }
 0x389   : > { %1444 = vst.msk [vmem:[%s2430_s27 + $0x8] sm:$0xff] %vm1442_vm6, %v1427_v2  ;;  %v1426_v36 = vsel %vm1184_vm5, %v1064_v51, %v1379_v4  ;;  %v1057_v51 = vmul.f32 %v1834_v52, %v2399_v35  ;;  %v976_v4 = vmul.f32 %v2359_v3, %v896_v56  ;;  %v979_v3 = vmul.f32 %v2361_v5, %v899_v34  ;;  %v1844_v0 = vpop.eup %1843 }
 0x38a   : > { %1443 = vst.msk [vmem:[%s2430_s27] sm:$0xff] %vm1442_vm6, %v1426_v36  ;;  %v1059_v36 = vmul.f32 %v1836_v46, %v2406_v53  ;;  %v900_v55 = vsub.f32 1.0, %v1842_v40  ;;  %v1074_v5 = vadd.f32 %v1058_v14, %v978_v20  ;;  %v1060_v41 = vmul.f32 %v1842_v40, %v2415_v17 }
 0x38b   : > { %v1385_v39 = vpop.permute.xlu1 %1384  ;;  %v1073_v10 = vadd.f32 %v1057_v51, %v977_v25  ;;  %v1072_v45 = vadd.f32 %v1056_v62, %v976_v4  ;;  %v903_v31 = vsub.f32 1.0, %v1844_v0  ;;  %v1063_v59 = vmul.f32 %v1844_v0, %v2419_v32 }
 0x38c   : > { %v1429_v57 = vsel %vm1184_vm5, %v1067_v12, %v1385_v39  ;;  %v1383_v49 = vpop.permute.xlu0 %1382  ;;  %v1075_v42 = vadd.f32 %v1059_v36, %v979_v3  ;;  %v1061_v39 = vmul.f32 %v1840_v43, %v2413_v44 }
 0x38d   : > { %1446 = vst.msk [vmem:[%s2430_s27 + $0x18] sm:$0xff] %vm1442_vm6, %v1429_v57  ;;  %v1428_v30 = vsel %vm1184_vm5, %v1066_v26, %v1383_v49  ;;  %v901_v26 = vsub.f32 1.0, %v1840_v43  ;;  %v1846_v49 = vpop.eup %1845 }
 0x38e   : > { %1445 = vst.msk [vmem:[%s2430_s27 + $0x10] sm:$0xff] %vm1442_vm6, %v1428_v30  ;;  %v980_v30 = vmul.f32 %v2367_v18, %v900_v55  ;;  %v902_v17 = vsub.f32 1.0, %v1846_v49  ;;  %v983_v18 = vmul.f32 %v2369_v22, %v903_v31 }
 0x38f   : > { %v1389_v48 = vpop.permute.xlu1 %1388  ;;  %v981_v11 = vmul.f32 %v2365_v16, %v901_v26 }
 0x390   : > { %v1431_v8 = vsel %vm1184_vm5, %v1069_v60, %v1389_v48  ;;  %v1387_v9 = vpop.permute.xlu0 %1386  ;;  %v1076_v16 = vadd.f32 %v1060_v41, %v980_v30  ;;  %v1062_v60 = vmul.f32 %v1846_v49, %v2422_v38  ;;  %v1079_v54 = vadd.f32 %v1063_v59, %v983_v18 }
 0x391   : > { %1448 = vst.msk [vmem:[%s2430_s27 + $0x28] sm:$0xff] %vm1442_vm6, %v1431_v8  ;;  %v1430_v27 = vsel %vm1184_vm5, %v1068_v7, %v1387_v9  ;;  %v1077_v23 = vadd.f32 %v1061_v39, %v981_v11  ;;  %v982_v7 = vmul.f32 %v2371_v24, %v902_v17 }
 0x392   : > { %1447 = vst.msk [vmem:[%s2430_s27 + $0x20] sm:$0xff] %vm1442_vm6, %v1430_v27 }
 0x393   : > { %v1393_v63 = vpop.permute.xlu1 %1392  ;;  %v1078_v48 = vadd.f32 %v1062_v60, %v982_v7 }
 0x394   : > { %v1433_v28 = vsel %vm1184_vm5, %v1071_v13, %v1393_v63  ;;  %v1391_v2 = vpop.permute.xlu0 %1390 }
 0x395   : > { %1450 = vst.msk [vmem:[%s2430_s27 + $0x38] sm:$0xff] %vm1442_vm6, %v1433_v28  ;;  %v1432_v35 = vsel %vm1184_vm5, %v1070_v61, %v1391_v2 }
 0x396   : > { %1449 = vst.msk [vmem:[%s2430_s27 + $0x30] sm:$0xff] %vm1442_vm6, %v1432_v35 }
 0x397   : > { %v1397_v12 = vpop.permute.xlu1 %1396 }
 0x398   : > { %v1435_v33 = vsel %vm1184_vm5, %v1073_v10, %v1397_v12  ;;  %v1395_v19 = vpop.permute.xlu0 %1394 }
 0x399   : > { %1452 = vst.msk [vmem:[%s2430_s27 + $0x48] sm:$0xff] %vm1442_vm6, %v1435_v33  ;;  %v1434_v53 = vsel %vm1184_vm5, %v1072_v45, %v1395_v19 }
 0x39a   : > { %1451 = vst.msk [vmem:[%s2430_s27 + $0x40] sm:$0xff] %vm1442_vm6, %v1434_v53 }
 0x39b   : > { %v1401_v57 = vpop.permute.xlu1 %1400 }
 0x39c   : > { %v1437_v29 = vsel %vm1184_vm5, %v1075_v42, %v1401_v57  ;;  %v1399_v21 = vpop.permute.xlu0 %1398 }
 0x39d   : > { %1454 = vst.msk [vmem:[%s2430_s27 + $0x58] sm:$0xff] %vm1442_vm6, %v1437_v29  ;;  %v1436_v44 = vsel %vm1184_vm5, %v1074_v5, %v1399_v21 }
 0x39e   : > { %1453 = vst.msk [vmem:[%s2430_s27 + $0x50] sm:$0xff] %vm1442_vm6, %v1436_v44 }
 0x39f   : > { %v1405_v6 = vpop.permute.xlu1 %1404 }
 0x3a0   : > { %v1439_v52 = vsel %vm1184_vm5, %v1077_v23, %v1405_v6  ;;  %v1403_v47 = vpop.permute.xlu0 %1402 }
 0x3a1   : > { %1456 = vst.msk [vmem:[%s2430_s27 + $0x68] sm:$0xff] %vm1442_vm6, %v1439_v52  ;;  %v1438_v32 = vsel %vm1184_vm5, %v1076_v16, %v1403_v47 }
 0x3a2   : > { %1455 = vst.msk [vmem:[%s2430_s27 + $0x60] sm:$0xff] %vm1442_vm6, %v1438_v32 }
 0x3a3   : > { %v1409_v15 = vpop.permute.xlu1 %1408 }
 0x3a4   : > { %v1441_v38 = vsel %vm1184_vm5, %v1079_v54, %v1409_v15  ;;  %v1407_v8 = vpop.permute.xlu0 %1406 }
 0x3a5   : > { %1458 = vst.msk [vmem:[%s2430_s27 + $0x78] sm:$0xff] %vm1442_vm6, %v1441_v38  ;;  %v1440_v22 = vsel %vm1184_vm5, %v1078_v48, %v1407_v8 }
 0x3a6   : > { %1457 = vst.msk [vmem:[%s2430_s27 + $0x70] sm:$0xff] %vm1442_vm6, %v1440_v22 }
 0x3a7 PF: > { %s19_s29 = sadd.s32 1, %s1853_s29  }
 0x3a8   : > { %p16_p4 = scmp.ge.s32.totalorder %s19_s29, 4  }
 0x3aa   :  { %18 = sbr.rel (!%p16_p4) target bundleno = 2 (0x2), region = 82 }

</bundles_post_ra>
